<compile_context>
chip_gen: v5e
topology: v5e:2x2
jax: 0.10.0
libtpu: 0.0.40
codegen_flags: <defaults>
</compile_context>

<pallas_src>
import jax
import jax.numpy as jnp
from jax import lax
from jax.experimental import pallas as pl
from jax.experimental.pallas import tpu as pltpu  # noqa: F401  (TPU backend)

NEG_SLOPE = 0.01  # nn.LeakyReLU default


def _leaky(x):
    return jnp.where(x >= 0, x, NEG_SLOPE * x)


def _leaky2(x):
    # leaky(leaky(x)) folded into a single select: sign is unchanged by the
    # first leaky, so the composition is just slope NEG_SLOPE**2 on x < 0.
    return jnp.where(x >= 0, x, (NEG_SLOPE * NEG_SLOPE) * x)


def _deg_scale(x):
    """In-kernel fromXtoA: returns diag(D^{-1/2}) as an (n, 1) column.

    Reference: A = tril(threshold(corrcoef(x)), -1) + I ; D = column sums of A
    (degAT sums dim=0).  Built transposed (corr is exactly symmetric here), so
    the column degree of A is a row reduction of A^T -> no in-kernel transpose.
    """
    n, m = x.shape
    if m <= 1:  # reference falls back to A = I  =>  deg = 1
        return jnp.ones((n, 1), jnp.float32)
    xc = x - jnp.mean(x, axis=1, keepdims=True)
    cov = lax.dot_general(xc, xc, (((1,), (1,)), ((), ())),
                          preferred_element_type=jnp.float32) / (m - 1)
    row = lax.broadcasted_iota(jnp.int32, (n, n), 0)
    col = lax.broadcasted_iota(jnp.int32, (n, n), 1)
    eye = jnp.where(row == col, 1.0, 0.0)
    var_r = jnp.sum(cov * eye, axis=1, keepdims=True)        # (n, 1) diag(cov)
    var_c = jnp.sum(cov * eye, axis=0, keepdims=True)        # (1, n) diag(cov)
    # outer product of inv-std FIRST -> corr is exactly symmetric.
    corr = cov * (lax.rsqrt(var_r) * lax.rsqrt(var_c))
    corr = jnp.clip(corr, -1.0, 1.0)                          # torch.corrcoef clamps
    amin = jnp.min(corr, keepdims=True)                       # (1, 1)
    amax = jnp.max(corr, keepdims=True)                       # (1, 1)
    thresh = amin + (amax - amin) * 0.5
    keep = jnp.where(corr < thresh, 0.0, 1.0)
    at = jnp.where(col > row, keep, 0.0) + eye                # A^T (strict upper + I)
    deg = jnp.sum(at, axis=1, keepdims=True)                  # (n, 1) column degrees of A
    return lax.rsqrt(deg)                                     # deg >= 1 (diag of A is 1)


def _make_fused_kernel(num_graphs, L1):
    def kernel(*refs):
        o_ref = refs[-1]
        branch_refs = refs[:3 * num_graphs]
        (l1wt_ref, l1b_ref, ler1wt_ref, ler1b_ref,
         ler2wt_ref, ler2b_ref, outwt_ref, outb_ref) = refs[3 * num_graphs:-1]

        # Shared weights loaded exactly once (single program, no grid).
        l1wt = l1wt_ref[...]
        l1b = l1b_ref[...]
        ler1wt = ler1wt_ref[...]
        ler1b = ler1b_ref[...]

        acc = ler2b_ref[...]                                  # (1, L2) running ler2 output
        for g in range(num_graphs):                           # shapes differ -> Python unroll
            x_ref, w_ref, bias_ref = branch_refs[3 * g:3 * g + 3]
            x = x_ref[...]                                    # (n, m)
            scale = _deg_scale(x)                             # (n, 1) = diag of D^-1/2
            h = jnp.dot(scale * x, w_ref[...],
                        preferred_element_type=jnp.float32) + bias_ref[...]   # (n, K)
            h = _leaky(h)
            h = _leaky(jnp.dot(h, l1wt,
                               preferred_element_type=jnp.float32) + l1b)     # (n, K)
            h = jnp.dot(h, ler1wt,
                        preferred_element_type=jnp.float32) + ler1b           # (n, L1)
            # branch LeakyReLU on the node-sum + head LeakyReLU on the concat,
            # folded into one select (sign-preserving composition).
            s = _leaky2(jnp.sum(h, axis=0, keepdims=True))    # (1, L1)
            # ler2 applied slice-wise == ler2(concat(...)); no concat/store.
            acc = acc + jnp.dot(s, ler2wt_ref[pl.ds(g * L1, L1), :],
                                preferred_element_type=jnp.float32)           # (1, L2)
        h = jnp.tanh(acc)
        o_ref[...] = jnp.dot(h, outwt_ref[...],
                             preferred_element_type=jnp.float32) + outb_ref[...]  # (1, out)
    return kernel


class PallasModel:
    def __init__(self, x_shapes, *, K, L1, L2, out, key):
        keys = iter(jax.random.split(key, 2 * len(x_shapes) + 8))

        def lin(kw, kb, in_f, out_f):
            bound = 1.0 / jnp.sqrt(in_f)
            w = jax.random.uniform(kw, (out_f, in_f), jnp.float32, -bound, bound)
            b = jax.random.uniform(kb, (out_f,), jnp.float32, -bound, bound)
            return w, b

        # per-graph parameters: W{i} ~ rand(m, K), b{i} ~ rand(n, 1)
        self.Ws, self.bs = [], []
        for (n, m) in x_shapes:
            self.Ws.append(jax.random.uniform(next(keys), (m, K), jnp.float32))
            self.bs.append(jax.random.uniform(next(keys), (n, 1), jnp.float32))

        l1_w, l1_b = lin(next(keys), next(keys), K, K)           # L1: K -> K
        ler1_w, ler1_b = lin(next(keys), next(keys), K, L1)      # ler1: K -> L1
        ler2_w, ler2_b = lin(next(keys), next(keys), len(x_shapes) * L1, L2)
        out_w, out_b = lin(next(keys), next(keys), L2, out)

        # pre-transpose Linear weights so the kernel does plain x @ W_t
        self.l1_wt, self.l1_b = l1_w.T, l1_b[None, :]
        self.ler1_wt, self.ler1_b = ler1_w.T, ler1_b[None, :]
        self.ler2_wt, self.ler2_b = ler2_w.T, ler2_b[None, :]
        self.out_wt, self.out_b = out_w.T, out_b[None, :]

        self.num_graphs = len(x_shapes)
        self.L1 = L1
        self.out_dim = out
        self._kernel = _make_fused_kernel(self.num_graphs, self.L1)
        self._call = jax.jit(self._forward)   # single compiled dispatch per call

    def _forward(self, *xs):
        args = []
        for x, W, b in zip(xs, self.Ws, self.bs):
            args.extend([x, W, b])
        args.extend([self.l1_wt, self.l1_b, self.ler1_wt, self.ler1_b,
                     self.ler2_wt, self.ler2_b, self.out_wt, self.out_b])
        # Single fused launch; all operands live as whole arrays in VMEM.
        y = pl.pallas_call(
            self._kernel,
            out_shape=jax.ShapeDtypeStruct((1, self.out_dim), jnp.float32),
        )(*args)
        return y[0]                                           # (out,) matches torch 1-D output

    def __call__(self, *xs):
        return self._call(*xs)


if __name__ == "__main__":
    key = jax.random.PRNGKey(0)
    k1, k2, kp = jax.random.split(key, 3)

    # two small "graphs": X1 = 8 nodes x 16 features, X2 = 6 nodes x 12 features
    X1 = jax.random.normal(k1, (8, 16), jnp.float32)
    X2 = jax.random.normal(k2, (6, 12), jnp.float32)

    model = PallasModel([X1.shape, X2.shape], K=32, L1=16, L2=32, out=8, key=kp)

    y = model(X1, X2)
    jax.block_until_ready(y)
    assert y.shape == (8,) and y.dtype == jnp.float32
    assert bool(jnp.isfinite(y).all())
    print("KERNEL_OK")
</pallas_src>

<mosaic_0001>
module attributes {stable_mosaic.version = 11 : i64} {
  func.func @kernel(%arg0: memref<8x16xf32, #tpu.memory_space<vmem>>, %arg1: memref<16x32xf32, #tpu.memory_space<vmem>>, %arg2: memref<8x1xf32, #tpu.memory_space<vmem>>, %arg3: memref<6x12xf32, #tpu.memory_space<vmem>>, %arg4: memref<12x32xf32, #tpu.memory_space<vmem>>, %arg5: memref<6x1xf32, #tpu.memory_space<vmem>>, %arg6: memref<32x32xf32, #tpu.memory_space<vmem>>, %arg7: memref<1x32xf32, #tpu.memory_space<vmem>>, %arg8: memref<32x16xf32, #tpu.memory_space<vmem>>, %arg9: memref<1x16xf32, #tpu.memory_space<vmem>>, %arg10: memref<32x32xf32, #tpu.memory_space<vmem>>, %arg11: memref<1x32xf32, #tpu.memory_space<vmem>>, %arg12: memref<32x8xf32, #tpu.memory_space<vmem>>, %arg13: memref<1x8xf32, #tpu.memory_space<vmem>>, %arg14: memref<1x8xf32, #tpu.memory_space<vmem>>) attributes {dimension_semantics = [], scalar_prefetch = 0 : i64, scratch_operands = 0 : i64, tpu.core_type = #tpu.core_type<tc>} {
    %c0 = arith.constant 0 : index
    %c0_0 = arith.constant 0 : index
    %0 = vector.load %arg6[%c0, %c0_0] : memref<32x32xf32, #tpu.memory_space<vmem>>, vector<32x32xf32>
    %c0_1 = arith.constant 0 : index
    %c0_2 = arith.constant 0 : index
    %1 = vector.load %arg7[%c0_1, %c0_2] : memref<1x32xf32, #tpu.memory_space<vmem>>, vector<1x32xf32>
    %c0_3 = arith.constant 0 : index
    %c0_4 = arith.constant 0 : index
    %2 = vector.load %arg8[%c0_3, %c0_4] : memref<32x16xf32, #tpu.memory_space<vmem>>, vector<32x16xf32>
    %c0_5 = arith.constant 0 : index
    %c0_6 = arith.constant 0 : index
    %3 = vector.load %arg9[%c0_5, %c0_6] : memref<1x16xf32, #tpu.memory_space<vmem>>, vector<1x16xf32>
    %c0_7 = arith.constant 0 : index
    %c0_8 = arith.constant 0 : index
    %4 = vector.load %arg11[%c0_7, %c0_8] : memref<1x32xf32, #tpu.memory_space<vmem>>, vector<1x32xf32>
    %c0_9 = arith.constant 0 : index
    %c0_10 = arith.constant 0 : index
    %5 = vector.load %arg0[%c0_9, %c0_10] : memref<8x16xf32, #tpu.memory_space<vmem>>, vector<8x16xf32>
    %cst = arith.constant dense<0.000000e+00> : vector<8xf32>
    %6 = vector.multi_reduction <add>, %5, %cst [1] : vector<8x16xf32> to vector<8xf32>
    %7 = vector.shape_cast %6 : vector<8xf32> to vector<8x1xf32>
    %cst_11 = arith.constant 1.600000e+01 : f32
    %8 = vector.broadcast %cst_11 : f32 to vector<8x1xf32>
    %9 = arith.divf %7, %8 : vector<8x1xf32>
    %10 = vector.broadcast %9 : vector<8x1xf32> to vector<8x16xf32>
    %11 = arith.subf %5, %10 : vector<8x16xf32>
    %cst_12 = arith.constant dense<0.000000e+00> : vector<8x8xf32>
    %12 = tpu.matmul %11, %11, %cst_12 {dimension_numbers = #tpu.dot_dimension_numbers<[1], [1], [0], [0], [0, 0, 1, 0], [], []>} : vector<8x16xf32>, vector<8x16xf32>, vector<8x8xf32> -> vector<8x8xf32>
    %cst_13 = arith.constant 1.500000e+01 : f32
    %13 = vector.broadcast %cst_13 : f32 to vector<8x8xf32>
    %14 = arith.divf %12, %13 : vector<8x8xf32>
    %15 = tpu.iota {dimensions = array<i32: 0>} : vector<8x8xi32>
    %16 = tpu.iota {dimensions = array<i32: 1>} : vector<8x8xi32>
    %17 = arith.cmpi eq, %15, %16 : vector<8x8xi32>
    %cst_14 = arith.constant 1.000000e+00 : f32
    %cst_15 = arith.constant 0.000000e+00 : f32
    %18 = vector.broadcast %cst_14 : f32 to vector<8x8xf32>
    %19 = vector.broadcast %cst_15 : f32 to vector<8x8xf32>
    %20 = arith.select %17, %18, %19 : vector<8x8xi1>, vector<8x8xf32>
    %21 = arith.mulf %14, %20 : vector<8x8xf32>
    %cst_16 = arith.constant dense<0.000000e+00> : vector<8xf32>
    %22 = vector.multi_reduction <add>, %21, %cst_16 [1] : vector<8x8xf32> to vector<8xf32>
    %23 = vector.shape_cast %22 : vector<8xf32> to vector<8x1xf32>
    %24 = arith.mulf %14, %20 : vector<8x8xf32>
    %cst_17 = arith.constant dense<0.000000e+00> : vector<8xf32>
    %25 = vector.multi_reduction <add>, %24, %cst_17 [0] : vector<8x8xf32> to vector<8xf32>
    %26 = vector.shape_cast %25 : vector<8xf32> to vector<1x8xf32>
    %27 = math.rsqrt %23 : vector<8x1xf32>
    %28 = math.rsqrt %26 : vector<1x8xf32>
    %29 = vector.broadcast %27 : vector<8x1xf32> to vector<8x8xf32>
    %30 = vector.broadcast %28 : vector<1x8xf32> to vector<8x8xf32>
    %31 = arith.mulf %29, %30 : vector<8x8xf32>
    %32 = arith.mulf %14, %31 : vector<8x8xf32>
    %cst_18 = arith.constant -1.000000e+00 : f32
    %cst_19 = arith.constant 1.000000e+00 : f32
    %33 = vector.broadcast %cst_18 : f32 to vector<8x8xf32>
    %34 = arith.maximumf %33, %32 : vector<8x8xf32>
    %35 = vector.broadcast %cst_19 : f32 to vector<8x8xf32>
    %36 = arith.minimumf %35, %34 : vector<8x8xf32>
    %37 = vector.shape_cast %36 : vector<8x8xf32> to vector<1x8x8xf32>
    %cst_20 = arith.constant dense<0x7F800000> : vector<1xf32>
    %38 = vector.multi_reduction <minimumf>, %37, %cst_20 [1, 2] : vector<1x8x8xf32> to vector<1xf32>
    %39 = vector.shape_cast %38 : vector<1xf32> to vector<1x1x1xf32>
    %40 = vector.extract %39[0, 0, 0] : f32 from vector<1x1x1xf32>
    %41 = vector.broadcast %40 : f32 to vector<1x1xf32>
    %42 = vector.shape_cast %36 : vector<8x8xf32> to vector<1x8x8xf32>
    %cst_21 = arith.constant dense<0xFF800000> : vector<1xf32>
    %43 = vector.multi_reduction <maximumf>, %42, %cst_21 [1, 2] : vector<1x8x8xf32> to vector<1xf32>
    %44 = vector.shape_cast %43 : vector<1xf32> to vector<1x1x1xf32>
    %45 = vector.extract %44[0, 0, 0] : f32 from vector<1x1x1xf32>
    %46 = vector.broadcast %45 : f32 to vector<1x1xf32>
    %47 = arith.subf %46, %41 : vector<1x1xf32>
    %cst_22 = arith.constant 5.000000e-01 : f32
    %48 = vector.broadcast %cst_22 : f32 to vector<1x1xf32>
    %49 = arith.mulf %47, %48 : vector<1x1xf32>
    %50 = arith.addf %41, %49 : vector<1x1xf32>
    %51 = vector.broadcast %50 : vector<1x1xf32> to vector<8x8xf32>
    %52 = arith.cmpf olt, %36, %51 : vector<8x8xf32>
    %cst_23 = arith.constant 0.000000e+00 : f32
    %cst_24 = arith.constant 1.000000e+00 : f32
    %53 = vector.broadcast %cst_23 : f32 to vector<8x8xf32>
    %54 = vector.broadcast %cst_24 : f32 to vector<8x8xf32>
    %55 = arith.select %52, %53, %54 : vector<8x8xi1>, vector<8x8xf32>
    %56 = arith.cmpi sgt, %16, %15 : vector<8x8xi32>
    %cst_25 = arith.constant 0.000000e+00 : f32
    %57 = vector.broadcast %cst_25 : f32 to vector<8x8xf32>
    %58 = arith.select %56, %55, %57 : vector<8x8xi1>, vector<8x8xf32>
    %59 = arith.addf %58, %20 : vector<8x8xf32>
    %cst_26 = arith.constant dense<0.000000e+00> : vector<8xf32>
    %60 = vector.multi_reduction <add>, %59, %cst_26 [1] : vector<8x8xf32> to vector<8xf32>
    %61 = vector.shape_cast %60 : vector<8xf32> to vector<8x1xf32>
    %62 = math.rsqrt %61 : vector<8x1xf32>
    %63 = vector.broadcast %62 : vector<8x1xf32> to vector<8x16xf32>
    %64 = arith.mulf %63, %5 : vector<8x16xf32>
    %c0_27 = arith.constant 0 : index
    %c0_28 = arith.constant 0 : index
    %65 = vector.load %arg1[%c0_27, %c0_28] : memref<16x32xf32, #tpu.memory_space<vmem>>, vector<16x32xf32>
    %cst_29 = arith.constant dense<0.000000e+00> : vector<8x32xf32>
    %66 = tpu.matmul %64, %65, %cst_29 {dimension_numbers = #tpu.dot_dimension_numbers<[1], [0], [0], [1], [0, 0, 1, 1], [], []>} : vector<8x16xf32>, vector<16x32xf32>, vector<8x32xf32> -> vector<8x32xf32>
    %c0_30 = arith.constant 0 : index
    %c0_31 = arith.constant 0 : index
    %67 = vector.load %arg2[%c0_30, %c0_31] : memref<8x1xf32, #tpu.memory_space<vmem>>, vector<8x1xf32>
    %68 = vector.broadcast %67 : vector<8x1xf32> to vector<8x32xf32>
    %69 = arith.addf %66, %68 : vector<8x32xf32>
    %cst_32 = arith.constant 0.000000e+00 : f32
    %70 = vector.broadcast %cst_32 : f32 to vector<8x32xf32>
    %71 = arith.cmpf oge, %69, %70 : vector<8x32xf32>
    %cst_33 = arith.constant 0.00999999977 : f32
    %72 = vector.broadcast %cst_33 : f32 to vector<8x32xf32>
    %73 = arith.mulf %72, %69 : vector<8x32xf32>
    %74 = arith.select %71, %69, %73 : vector<8x32xi1>, vector<8x32xf32>
    %cst_34 = arith.constant dense<0.000000e+00> : vector<8x32xf32>
    %75 = tpu.matmul %74, %0, %cst_34 {dimension_numbers = #tpu.dot_dimension_numbers<[1], [0], [0], [1], [0, 0, 1, 1], [], []>} : vector<8x32xf32>, vector<32x32xf32>, vector<8x32xf32> -> vector<8x32xf32>
    %76 = vector.broadcast %1 : vector<1x32xf32> to vector<8x32xf32>
    %77 = arith.addf %75, %76 : vector<8x32xf32>
    %cst_35 = arith.constant 0.000000e+00 : f32
    %78 = vector.broadcast %cst_35 : f32 to vector<8x32xf32>
    %79 = arith.cmpf oge, %77, %78 : vector<8x32xf32>
    %cst_36 = arith.constant 0.00999999977 : f32
    %80 = vector.broadcast %cst_36 : f32 to vector<8x32xf32>
    %81 = arith.mulf %80, %77 : vector<8x32xf32>
    %82 = arith.select %79, %77, %81 : vector<8x32xi1>, vector<8x32xf32>
    %cst_37 = arith.constant dense<0.000000e+00> : vector<8x16xf32>
    %83 = tpu.matmul %82, %2, %cst_37 {dimension_numbers = #tpu.dot_dimension_numbers<[1], [0], [0], [1], [0, 0, 1, 1], [], []>} : vector<8x32xf32>, vector<32x16xf32>, vector<8x16xf32> -> vector<8x16xf32>
    %84 = vector.broadcast %3 : vector<1x16xf32> to vector<8x16xf32>
    %85 = arith.addf %83, %84 : vector<8x16xf32>
    %cst_38 = arith.constant dense<0.000000e+00> : vector<16xf32>
    %86 = vector.multi_reduction <add>, %85, %cst_38 [0] : vector<8x16xf32> to vector<16xf32>
    %87 = vector.shape_cast %86 : vector<16xf32> to vector<1x16xf32>
    %cst_39 = arith.constant 0.000000e+00 : f32
    %88 = vector.broadcast %cst_39 : f32 to vector<1x16xf32>
    %89 = arith.cmpf oge, %87, %88 : vector<1x16xf32>
    %cst_40 = arith.constant 9.99999974E-5 : f32
    %90 = vector.broadcast %cst_40 : f32 to vector<1x16xf32>
    %91 = arith.mulf %90, %87 : vector<1x16xf32>
    %92 = arith.select %89, %87, %91 : vector<1x16xi1>, vector<1x16xf32>
    %c0_41 = arith.constant 0 : index
    %c0_42 = arith.constant 0 : index
    %93 = vector.load %arg10[%c0_41, %c0_42] : memref<32x32xf32, #tpu.memory_space<vmem>>, vector<16x32xf32>
    %cst_43 = arith.constant dense<0.000000e+00> : vector<1x32xf32>
    %94 = tpu.matmul %92, %93, %cst_43 {dimension_numbers = #tpu.dot_dimension_numbers<[1], [0], [0], [1], [0, 0, 1, 1], [], []>} : vector<1x16xf32>, vector<16x32xf32>, vector<1x32xf32> -> vector<1x32xf32>
    %95 = arith.addf %4, %94 : vector<1x32xf32>
    %c0_44 = arith.constant 0 : index
    %c0_45 = arith.constant 0 : index
    %96 = vector.load %arg3[%c0_44, %c0_45] : memref<6x12xf32, #tpu.memory_space<vmem>>, vector<6x12xf32>
    %cst_46 = arith.constant dense<0.000000e+00> : vector<6xf32>
    %97 = vector.multi_reduction <add>, %96, %cst_46 [1] : vector<6x12xf32> to vector<6xf32>
    %98 = vector.shape_cast %97 : vector<6xf32> to vector<6x1xf32>
    %cst_47 = arith.constant 1.200000e+01 : f32
    %99 = vector.broadcast %cst_47 : f32 to vector<6x1xf32>
    %100 = arith.divf %98, %99 : vector<6x1xf32>
    %101 = vector.broadcast %100 : vector<6x1xf32> to vector<6x12xf32>
    %102 = arith.subf %96, %101 : vector<6x12xf32>
    %cst_48 = arith.constant dense<0.000000e+00> : vector<6x6xf32>
    %103 = tpu.matmul %102, %102, %cst_48 {dimension_numbers = #tpu.dot_dimension_numbers<[1], [1], [0], [0], [0, 0, 1, 0], [], []>} : vector<6x12xf32>, vector<6x12xf32>, vector<6x6xf32> -> vector<6x6xf32>
    %cst_49 = arith.constant 1.100000e+01 : f32
    %104 = vector.broadcast %cst_49 : f32 to vector<6x6xf32>
    %105 = arith.divf %103, %104 : vector<6x6xf32>
    %106 = tpu.iota {dimensions = array<i32: 0>} : vector<6x6xi32>
    %107 = tpu.iota {dimensions = array<i32: 1>} : vector<6x6xi32>
    %108 = arith.cmpi eq, %106, %107 : vector<6x6xi32>
    %cst_50 = arith.constant 1.000000e+00 : f32
    %cst_51 = arith.constant 0.000000e+00 : f32
    %109 = vector.broadcast %cst_50 : f32 to vector<6x6xf32>
    %110 = vector.broadcast %cst_51 : f32 to vector<6x6xf32>
    %111 = arith.select %108, %109, %110 : vector<6x6xi1>, vector<6x6xf32>
    %112 = arith.mulf %105, %111 : vector<6x6xf32>
    %cst_52 = arith.constant dense<0.000000e+00> : vector<6xf32>
    %113 = vector.multi_reduction <add>, %112, %cst_52 [1] : vector<6x6xf32> to vector<6xf32>
    %114 = vector.shape_cast %113 : vector<6xf32> to vector<6x1xf32>
    %115 = arith.mulf %105, %111 : vector<6x6xf32>
    %cst_53 = arith.constant dense<0.000000e+00> : vector<6xf32>
    %116 = vector.multi_reduction <add>, %115, %cst_53 [0] : vector<6x6xf32> to vector<6xf32>
    %117 = vector.shape_cast %116 : vector<6xf32> to vector<1x6xf32>
    %118 = math.rsqrt %114 : vector<6x1xf32>
    %119 = math.rsqrt %117 : vector<1x6xf32>
    %120 = vector.broadcast %118 : vector<6x1xf32> to vector<6x6xf32>
    %121 = vector.broadcast %119 : vector<1x6xf32> to vector<6x6xf32>
    %122 = arith.mulf %120, %121 : vector<6x6xf32>
    %123 = arith.mulf %105, %122 : vector<6x6xf32>
    %cst_54 = arith.constant -1.000000e+00 : f32
    %cst_55 = arith.constant 1.000000e+00 : f32
    %124 = vector.broadcast %cst_54 : f32 to vector<6x6xf32>
    %125 = arith.maximumf %124, %123 : vector<6x6xf32>
    %126 = vector.broadcast %cst_55 : f32 to vector<6x6xf32>
    %127 = arith.minimumf %126, %125 : vector<6x6xf32>
    %128 = vector.shape_cast %127 : vector<6x6xf32> to vector<1x6x6xf32>
    %cst_56 = arith.constant dense<0x7F800000> : vector<1xf32>
    %129 = vector.multi_reduction <minimumf>, %128, %cst_56 [1, 2] : vector<1x6x6xf32> to vector<1xf32>
    %130 = vector.shape_cast %129 : vector<1xf32> to vector<1x1x1xf32>
    %131 = vector.extract %130[0, 0, 0] : f32 from vector<1x1x1xf32>
    %132 = vector.broadcast %131 : f32 to vector<1x1xf32>
    %133 = vector.shape_cast %127 : vector<6x6xf32> to vector<1x6x6xf32>
    %cst_57 = arith.constant dense<0xFF800000> : vector<1xf32>
    %134 = vector.multi_reduction <maximumf>, %133, %cst_57 [1, 2] : vector<1x6x6xf32> to vector<1xf32>
    %135 = vector.shape_cast %134 : vector<1xf32> to vector<1x1x1xf32>
    %136 = vector.extract %135[0, 0, 0] : f32 from vector<1x1x1xf32>
    %137 = vector.broadcast %136 : f32 to vector<1x1xf32>
    %138 = arith.subf %137, %132 : vector<1x1xf32>
    %cst_58 = arith.constant 5.000000e-01 : f32
    %139 = vector.broadcast %cst_58 : f32 to vector<1x1xf32>
    %140 = arith.mulf %138, %139 : vector<1x1xf32>
    %141 = arith.addf %132, %140 : vector<1x1xf32>
    %142 = vector.broadcast %141 : vector<1x1xf32> to vector<6x6xf32>
    %143 = arith.cmpf olt, %127, %142 : vector<6x6xf32>
    %cst_59 = arith.constant 0.000000e+00 : f32
    %cst_60 = arith.constant 1.000000e+00 : f32
    %144 = vector.broadcast %cst_59 : f32 to vector<6x6xf32>
    %145 = vector.broadcast %cst_60 : f32 to vector<6x6xf32>
    %146 = arith.select %143, %144, %145 : vector<6x6xi1>, vector<6x6xf32>
    %147 = arith.cmpi sgt, %107, %106 : vector<6x6xi32>
    %cst_61 = arith.constant 0.000000e+00 : f32
    %148 = vector.broadcast %cst_61 : f32 to vector<6x6xf32>
    %149 = arith.select %147, %146, %148 : vector<6x6xi1>, vector<6x6xf32>
    %150 = arith.addf %149, %111 : vector<6x6xf32>
    %cst_62 = arith.constant dense<0.000000e+00> : vector<6xf32>
    %151 = vector.multi_reduction <add>, %150, %cst_62 [1] : vector<6x6xf32> to vector<6xf32>
    %152 = vector.shape_cast %151 : vector<6xf32> to vector<6x1xf32>
    %153 = math.rsqrt %152 : vector<6x1xf32>
    %154 = vector.broadcast %153 : vector<6x1xf32> to vector<6x12xf32>
    %155 = arith.mulf %154, %96 : vector<6x12xf32>
    %c0_63 = arith.constant 0 : index
    %c0_64 = arith.constant 0 : index
    %156 = vector.load %arg4[%c0_63, %c0_64] : memref<12x32xf32, #tpu.memory_space<vmem>>, vector<12x32xf32>
    %cst_65 = arith.constant dense<0.000000e+00> : vector<6x32xf32>
    %157 = tpu.matmul %155, %156, %cst_65 {dimension_numbers = #tpu.dot_dimension_numbers<[1], [0], [0], [1], [0, 0, 1, 1], [], []>} : vector<6x12xf32>, vector<12x32xf32>, vector<6x32xf32> -> vector<6x32xf32>
    %c0_66 = arith.constant 0 : index
    %c0_67 = arith.constant 0 : index
    %158 = vector.load %arg5[%c0_66, %c0_67] : memref<6x1xf32, #tpu.memory_space<vmem>>, vector<6x1xf32>
    %159 = vector.broadcast %158 : vector<6x1xf32> to vector<6x32xf32>
    %160 = arith.addf %157, %159 : vector<6x32xf32>
    %cst_68 = arith.constant 0.000000e+00 : f32
    %161 = vector.broadcast %cst_68 : f32 to vector<6x32xf32>
    %162 = arith.cmpf oge, %160, %161 : vector<6x32xf32>
    %cst_69 = arith.constant 0.00999999977 : f32
    %163 = vector.broadcast %cst_69 : f32 to vector<6x32xf32>
    %164 = arith.mulf %163, %160 : vector<6x32xf32>
    %165 = arith.select %162, %160, %164 : vector<6x32xi1>, vector<6x32xf32>
    %cst_70 = arith.constant dense<0.000000e+00> : vector<6x32xf32>
    %166 = tpu.matmul %165, %0, %cst_70 {dimension_numbers = #tpu.dot_dimension_numbers<[1], [0], [0], [1], [0, 0, 1, 1], [], []>} : vector<6x32xf32>, vector<32x32xf32>, vector<6x32xf32> -> vector<6x32xf32>
    %167 = vector.broadcast %1 : vector<1x32xf32> to vector<6x32xf32>
    %168 = arith.addf %166, %167 : vector<6x32xf32>
    %cst_71 = arith.constant 0.000000e+00 : f32
    %169 = vector.broadcast %cst_71 : f32 to vector<6x32xf32>
    %170 = arith.cmpf oge, %168, %169 : vector<6x32xf32>
    %cst_72 = arith.constant 0.00999999977 : f32
    %171 = vector.broadcast %cst_72 : f32 to vector<6x32xf32>
    %172 = arith.mulf %171, %168 : vector<6x32xf32>
    %173 = arith.select %170, %168, %172 : vector<6x32xi1>, vector<6x32xf32>
    %cst_73 = arith.constant dense<0.000000e+00> : vector<6x16xf32>
    %174 = tpu.matmul %173, %2, %cst_73 {dimension_numbers = #tpu.dot_dimension_numbers<[1], [0], [0], [1], [0, 0, 1, 1], [], []>} : vector<6x32xf32>, vector<32x16xf32>, vector<6x16xf32> -> vector<6x16xf32>
    %175 = vector.broadcast %3 : vector<1x16xf32> to vector<6x16xf32>
    %176 = arith.addf %174, %175 : vector<6x16xf32>
    %cst_74 = arith.constant dense<0.000000e+00> : vector<16xf32>
    %177 = vector.multi_reduction <add>, %176, %cst_74 [0] : vector<6x16xf32> to vector<16xf32>
    %178 = vector.shape_cast %177 : vector<16xf32> to vector<1x16xf32>
    %cst_75 = arith.constant 0.000000e+00 : f32
    %179 = vector.broadcast %cst_75 : f32 to vector<1x16xf32>
    %180 = arith.cmpf oge, %178, %179 : vector<1x16xf32>
    %cst_76 = arith.constant 9.99999974E-5 : f32
    %181 = vector.broadcast %cst_76 : f32 to vector<1x16xf32>
    %182 = arith.mulf %181, %178 : vector<1x16xf32>
    %183 = arith.select %180, %178, %182 : vector<1x16xi1>, vector<1x16xf32>
    %c16 = arith.constant 16 : index
    %c0_77 = arith.constant 0 : index
    %184 = vector.load %arg10[%c16, %c0_77] : memref<32x32xf32, #tpu.memory_space<vmem>>, vector<16x32xf32>
    %cst_78 = arith.constant dense<0.000000e+00> : vector<1x32xf32>
    %185 = tpu.matmul %183, %184, %cst_78 {dimension_numbers = #tpu.dot_dimension_numbers<[1], [0], [0], [1], [0, 0, 1, 1], [], []>} : vector<1x16xf32>, vector<16x32xf32>, vector<1x32xf32> -> vector<1x32xf32>
    %186 = arith.addf %95, %185 : vector<1x32xf32>
    %187 = math.tanh %186 : vector<1x32xf32>
    %c0_79 = arith.constant 0 : index
    %c0_80 = arith.constant 0 : index
    %188 = vector.load %arg12[%c0_79, %c0_80] : memref<32x8xf32, #tpu.memory_space<vmem>>, vector<32x8xf32>
    %cst_81 = arith.constant dense<0.000000e+00> : vector<1x8xf32>
    %189 = tpu.matmul %187, %188, %cst_81 {dimension_numbers = #tpu.dot_dimension_numbers<[1], [0], [0], [1], [0, 0, 1, 1], [], []>} : vector<1x32xf32>, vector<32x8xf32>, vector<1x8xf32> -> vector<1x8xf32>
    %c0_82 = arith.constant 0 : index
    %c0_83 = arith.constant 0 : index
    %190 = vector.load %arg13[%c0_82, %c0_83] : memref<1x8xf32, #tpu.memory_space<vmem>>, vector<1x8xf32>
    %191 = arith.addf %189, %190 : vector<1x8xf32>
    %c0_84 = arith.constant 0 : index
    %c0_85 = arith.constant 0 : index
    %192 = vector.load %arg14[%c0_84, %c0_85] : memref<1x8xf32, #tpu.memory_space<vmem>>, vector<1x8xf32>
    tpu.vector_store %arg14[%c0_84, %c0_85], %191 {strides = array<i32>} : memref<1x8xf32, #tpu.memory_space<vmem>>, vector<1x8xf32>,
    return
  }
}

</mosaic_0001>

<bundles_post_ra>
// kernel: _forward.1
= control target key start
LH: loop header
LB: loop body
LE: loop exit
PB: predicated region body
PF: predicated region fallthrough
CT: control target
= control target key end

     0   :  { %19 = vsyncpa [#allocation3], 0  ;;  %s1329_s0 = inlined_call_operand.hbm [shape: f32[8,16], index: 0, kind: input, shape index: {}]   ;;  %s1330_s1 = inlined_call_operand.hbm [shape: f32[16,32], index: 1, kind: input, shape index: {}]   ;;  %s1331_s2 = inlined_call_operand.hbm [shape: f32[8,1], index: 2, kind: input, shape index: {}]   ;;  %s1332_s3 = inlined_call_operand.hbm [shape: f32[6,12], index: 3, kind: input, shape index: {}]   ;;  %s1333_s4 = inlined_call_operand.hbm [shape: f32[12,32], index: 4, kind: input, shape index: {}]   ;;  %s1334_s5 = inlined_call_operand.hbm [shape: f32[6,1], index: 5, kind: input, shape index: {}]   ;;  %s1335_s6 = inlined_call_operand.hbm [shape: f32[32,32], index: 6, kind: input, shape index: {}]   ;;  %s1336_s7 = inlined_call_operand.vmem [shape: f32[1,32], index: 7, kind: input, shape index: {}]   ;;  %s1337_s8 = inlined_call_operand.hbm [shape: f32[32,16], index: 8, kind: input, shape index: {}]   ;;  %s1338_s9 = inlined_call_operand.vmem [shape: f32[1,16], index: 9, kind: input, shape index: {}]   ;;  %s1339_s10 = inlined_call_operand.hbm [shape: f32[32,32], index: 10, kind: input, shape index: {}]   ;;  %s1340_s11 = inlined_call_operand.vmem [shape: f32[1,32], index: 11, kind: input, shape index: {}]   ;;  %s1341_s12 = inlined_call_operand.hbm [shape: f32[32,8], index: 12, kind: input, shape index: {}]   ;;  %s1342_s13 = inlined_call_operand.vmem [shape: f32[1,8], index: 13, kind: input, shape index: {}]   ;;  %s1343_s14 = inlined_call_operand.hbm [shape: f32[1,8], index: 14, kind: output, shape index: {}]  }
   0x1   :  { %20 = vsyncpa [#allocation6], 0 }
   0x2   :  { %21 = vsyncpa [#allocation9], 0 }
   0x3   :  { %22 = vsyncpa [#allocation12], 0 }
   0x4   :  { %23 = vsyncpa [#allocation15], 0 }
   0x5   :  { %24 = vsyncpa [#allocation18], 0  ;;  %s41_s15 = sshll.u32 %s1330_s1, 4  ;;  %s42_s15 = int_to_ptr.hbm [resolvable:$true] %s41_s15 }
   0x6   :  { %25 = vsyncpa [#allocation4], 0  ;;  %s1112_s16 = smov [#allocation5]   ;;  %s66_s20 = sshll.u32 %s1332_s3, 4  ;;  %s67_s20 = int_to_ptr.hbm [resolvable:$true] %s66_s20 }
   0x7   :  { %s43_s17 = sshll.u32 %s1112_s16, 4  ;;  %s1113_s21 = smov 128   ;;  %s44_s17 = int_to_ptr.vmem [resolvable:$true] %s43_s17 }
   0x8   :  { %s1114_s22 = smov 8   ;;  %s1115_s23 = smov [#allocation8]  }
   0x9   :  { %49 = dma.hbm_to_vmem [thread:$0]  %s42_s15, 256, %s44_s17, [#allocation6], %s1113_s21, %s1113_s21, %s1114_s22  }
   0xa   :  { %s68_s24 = sshll.u32 %s1115_s23, 4  ;;  %s90_s26 = sshll.u32 %s1334_s5, 4  ;;  %s69_s24 = int_to_ptr.vmem [resolvable:$true] %s68_s24  ;;  %s91_s26 = int_to_ptr.hbm [resolvable:$true] %s90_s26 }
   0xb   :  { %71 = dma.hbm_to_vmem [thread:$0]  %s67_s20, 128, %s69_s24, [#allocation9]  }
   0xc   :  { %s115_s3 = sshll.u32 %s1337_s8, 4  ;;  %s1116_s29 = smov [#allocation11]   ;;  %s116_s3 = int_to_ptr.hbm [resolvable:$true] %s115_s3 }
   0xd   :  { %s92_s30 = sshll.u32 %s1116_s29, 4  ;;  %s1117_s15 = smov [#allocation14]   ;;  %s93_s30 = int_to_ptr.vmem [resolvable:$true] %s92_s30 }
   0xe   :  { %95 = dma.hbm_to_vmem [thread:$0]  %s91_s26, 128, %s93_s30, [#allocation12]  }
   0xf   :  { %s117_s16 = sshll.u32 %s1117_s15, 4  ;;  %s31_s19 = sshll.u32 %s1329_s0, 4  ;;  %s118_s16 = int_to_ptr.vmem [resolvable:$true] %s117_s16  ;;  %s32_s19 = int_to_ptr.hbm [resolvable:$true] %s31_s19 }
  0x10   :  { %123 = dma.hbm_to_vmem [thread:$0]  %s116_s3, 512, %s118_s16, [#allocation15], %s1113_s21, %s1113_s21, %s1114_s22  }
  0x11   :  { %s55_s8 = sshll.u32 %s1331_s2, 4  ;;  %s1118_s23 = smov [#allocation2]   ;;  %s56_s8 = int_to_ptr.hbm [resolvable:$true] %s55_s8 }
  0x12   :  { %s33_s24 = sshll.u32 %s1118_s23, 4  ;;  %s1119_s25 = smov [#allocation7]   ;;  %s34_s24 = int_to_ptr.vmem [resolvable:$true] %s33_s24 }
  0x13   :  { %36 = dma.hbm_to_vmem [thread:$0]  %s32_s19, 128, %s34_s24, [#allocation3]  }
  0x14   :  { %s57_s1 = sshll.u32 %s1119_s25, 4  ;;  %s76_s0 = sshll.u32 %s1333_s4, 4  ;;  %s58_s1 = int_to_ptr.vmem [resolvable:$true] %s57_s1  ;;  %s77_s0 = int_to_ptr.hbm [resolvable:$true] %s76_s0 }
  0x15   :  { %60 = dma.hbm_to_vmem [thread:$0]  %s56_s8, 128, %s58_s1, [#allocation6]  }
  0x16   :  { %s100_s29 = sshll.u32 %s1335_s6, 4  ;;  %s1120_s30 = smov [#allocation10]   ;;  %s101_s29 = int_to_ptr.hbm [resolvable:$true] %s100_s29 }
  0x17   :  { %s78_s2 = sshll.u32 %s1120_s30, 4  ;;  %s1121_s15 = smov [#allocation13]   ;;  %s79_s2 = int_to_ptr.vmem [resolvable:$true] %s78_s2 }
  0x18   :  { %84 = dma.hbm_to_vmem [thread:$0]  %s77_s0, 256, %s79_s2, [#allocation9], %s1113_s21, %s1113_s21, %s1114_s22  }
  0x19   :  { %s102_s16 = sshll.u32 %s1121_s15, 4  ;;  %s130_s4 = sshll.u32 %s1339_s10, 4  ;;  %s103_s16 = int_to_ptr.vmem [resolvable:$true] %s102_s16  ;;  %s131_s4 = int_to_ptr.hbm [resolvable:$true] %s130_s4 }
  0x1a   :  { %108 = dma.hbm_to_vmem [thread:$0]  %s101_s29, 512, %s103_s16, [#allocation12], %s1113_s21, %s1113_s21, %s1114_s22  }
  0x1b   :  { %s145_s5 = sshll.u32 %s1341_s12, 4  ;;  %s1122_s20 = smov [#allocation16]   ;;  %s146_s5 = int_to_ptr.hbm [resolvable:$true] %s145_s5 }
  0x1c   :  { %s132_s8 = sshll.u32 %s1122_s20, 4  ;;  %s1123_s23 = smov [#allocation17]   ;;  %s133_s8 = int_to_ptr.vmem [resolvable:$true] %s132_s8 }
  0x1d   :  { %138 = dma.hbm_to_vmem [thread:$0]  %s131_s4, 512, %s133_s8, [#allocation15], %s1113_s21, %s1113_s21, %s1114_s22  }
  0x1e   :  { %s147_s10 = sshll.u32 %s1123_s23, 4  ;;  %s148_s10 = int_to_ptr.vmem [resolvable:$true] %s147_s10 }
  0x1f   :  { %153 = dma.hbm_to_vmem [thread:$0]  %s146_s5, 512, %s148_s10, [#allocation18], %s1113_s21, %s1113_s21, %s1114_s22  }
  0x20   :  { %1098 = dma.done.wait [#allocation3], 128  }
  0x21   :  { %1099 = vsyncadd [#allocation3], 4294967168 }
  0x22   :  { %1100 = dma.done.wait [#allocation6], 384  }
  0x23   :  { %1101 = vsyncadd [#allocation6], 4294966912 }
  0x24   :  { %1102 = dma.done.wait [#allocation9], 384  }
  0x25   :  { %1103 = vsyncadd [#allocation9], 4294966912 }
  0x26   :  { %1104 = dma.done.wait [#allocation12], 640  }
  0x27   :  { %1105 = vsyncadd [#allocation12], 4294966656 }
  0x28   :  { %1106 = dma.done.wait [#allocation15], 1024  }
  0x29   :  { %1107 = vsyncadd [#allocation15], 4294966272 }
  0x2a   :  { %1108 = dma.done.wait [#allocation18], 512  }
  0x2b   :  { %1109 = vsyncadd [#allocation18], 4294966784  ;;  %vm208_vm0 = vcmask 130048   ;;  %v1255_v0 = vld [vmem:[#allocation2] sm:$0xff]  ;;  %v1124_v2 = vmov 16.0   ;;  %v1125_v12 = vmov 15.0   ;;  %v252_v16 = vlaneseq }
  0x2c   :  { %v209_v1 = vsel %vm208_vm0, %v1255_v0, 0.0  ;;  %812 = vrcp.f32 %v1124_v2  ;;  %v1126_v23 = vmov 0.0   ;;  %vm259_vm4 = vcmask 64512   ;;  %s1131_s3 = smov [#allocation19]   ;;  %s749_s15 = sshll.u32 %s1343_s14, 4  ;;  %s750_s15 = int_to_ptr.hbm [resolvable:$true] %s749_s15 }
  0x2d   :  { %210 = vadd.xlane.f32.xlu0 %v209_v1  ;;  %814 = vrcp.f32 %v1125_v12  ;;  %v1262_v18 = vshrl.u32 %v252_v16, 7  ;;  %v1264_v19 = vand.u32 127, %v252_v16  ;;  %vm464_vm13 = vcmask 95232   ;;  %s747_s29 = sshll.u32 %s1131_s3, 4  ;;  %s748_s29 = int_to_ptr.vmem [resolvable:$true] %s747_s29 }
  0x2e   :  { %vm477_vm15 = vcmask 97280  }
  0x2f   :  { %vm256_vm3 = vcmp.eq.s32.totalorder %v1262_v18, %v1264_v19  ;;  %vm320_vm11 = vcmp.gt.s32.totalorder %v1264_v19, %v1262_v18 }
  0x30   :  { %v1268_v24 = vsel %vm256_vm3, 1.0, %v1126_v23 }
  0x32   :  { %v813_v3 = vpop.eup %812 }
  0x33   :  { %v213_v4 = vmul.f32 16.0, %v813_v3  ;;  %vm217_vm1 = vweird.f32 %v813_v3  ;;  %v815_v13 = vpop.eup %814 }
  0x34   :  { %v245_v14 = vmul.f32 15.0, %v815_v13  ;;  %vm249_vm2 = vweird.f32 %v815_v13 }
  0x35   :  { %v214_v5 = vsub.f32 1.0, %v213_v4 }
  0x36   :  { %v246_v15 = vsub.f32 1.0, %v245_v14 }
  0x37   :  { %v215_v6 = vmul.f32 %v813_v3, %v214_v5 }
  0x38   :  { %v247_v17 = vmul.f32 %v815_v13, %v246_v15  ;;  %v1282_v15 = vld [vmem:[#allocation8] sm:$0x3f] }
  0x39   :  { %v216_v7 = vadd.f32 %v813_v3, %v215_v6  ;;  %v465_v16 = vsel %vm464_vm13, %v1282_v15, 0.0 }
  0x3a   :  { %v248_v20 = vadd.f32 %v815_v13, %v247_v17  ;;  %v1128_v17 = vmov 12.0  }
  0x3b   :  { %v218_v8 = vsel %vm217_vm1, %v813_v3, %v216_v7 }
  0x3c   :  { %v250_v21 = vsel %vm249_vm2, %v815_v13, %v248_v20  ;;  %v338_v20 = vld [vmem:[#allocation5 + $0x8] sm:$0xff] }
  0x3d   :  { %362 = vmatpush.msra.mxu1 %v338_v20 }
  0xa0   :  { %v211_v9 = vpop.xlane.xlu0 %210 }
  0xa1   :  { %v219_v10 = vmul.f32 %v218_v8, %v211_v9 }
  0xa3   :  { %v220_v11 = vsub.f32 %v1255_v0, %v219_v10  ;;  %v1127_v10 = vmov 1.0  }
  0xa5   :  { %764 = vmatpush.xpose.msk.msra.mxu0 %vm208_vm0, %v220_v11 }
  0xa8   :  { %765 = vmatmul.msk.f32.vlgmr.msra.gmra.mxu0 %vm208_vm0, %v220_v11 }
 0x125   :  { %v241_v22 = vpop.f32.mrf.mxu0 }
 0x126   :  { %v251_v25 = vmul.f32 %v250_v21, %v241_v22  ;;  %v337_v21 = vld [vmem:[#allocation5] sm:$0xff] }
 0x127   :  { %363 = vmatpush.msra.mxu1 %v337_v21 }
 0x128   :  { %v258_v26 = vmul.f32 %v1268_v24, %v251_v25 }
 0x12a   :  { %v260_v27 = vsel %vm259_vm4, %v258_v26, 0.0 }
 0x12b   :  { %261 = vadd.xlane.f32.xlu0 %v260_v27  ;;  %v263_v28 = vrot.slane %v260_v27, 4 }
 0x12d   :  { %v264_v29 = vadd.f32 %v263_v28, %v260_v27 }
 0x12f   :  { %v265_v30 = vrot.slane %v264_v29, 2 }
 0x131   :  { %v266_v31 = vadd.f32 %v265_v30, %v264_v29 }
 0x133   :  { %v267_v32 = vrot.slane %v266_v31, 1 }
 0x135   :  { %v268_v33 = vadd.f32 %v267_v32, %v266_v31 }
 0x137   :  { %816 = vrsqrt.f32 %v268_v33  ;;  %vm285_vm7 = vweird.f32 %v268_v33 }
 0x13d   :  { %v817_v34 = vpop.eup %816 }
 0x13e   :  { %v280_v35 = vmul.f32 %v817_v34, %v268_v33  ;;  %vm286_vm5 = vweird.f32 %v817_v34 }
 0x13f   :  { %vm287_vm9 = vmor %vm285_vm7, %vm286_vm5  ;;  %vm510_vm5 = vcmask 46080  }
 0x140   :  { %v281_v37 = vmul.f32 %v817_v34, %v280_v35 }
 0x142   :  { %v282_v38 = vmul.f32 0.5, %v281_v37 }
 0x144   :  { %v283_v42 = vsub.f32 1.5, %v282_v38 }
 0x146   :  { %v284_v45 = vmul.f32 %v817_v34, %v283_v42 }
 0x148   :  { %v288_v48 = vsel %vm287_vm9, %v817_v34, %v284_v45 }
 0x19e   :  { %v262_v36 = vpop.xlane.xlu0 %261 }
 0x19f   :  { %818 = vrsqrt.f32 %v262_v36  ;;  %vm275_vm8 = vweird.f32 %v262_v36 }
 0x1a0   :  { %820 = vrcp.f32 %v1128_v17 }
 0x1a5   :  { %v819_v39 = vpop.eup %818 }
 0x1a6   :  { %v270_v40 = vmul.f32 %v819_v39, %v262_v36  ;;  %vm276_vm6 = vweird.f32 %v819_v39  ;;  %v821_v22 = vpop.eup %820 }
 0x1a7   :  { %vm277_vm10 = vmor %vm275_vm8, %vm276_vm6  ;;  %v469_v23 = vmul.f32 12.0, %v821_v22  ;;  %vm473_vm14 = vweird.f32 %v821_v22 }
 0x1a8   :  { %v271_v41 = vmul.f32 %v819_v39, %v270_v40 }
 0x1aa   :  { %v272_v43 = vmul.f32 0.5, %v271_v41  ;;  %v1129_v41 = vmov 11.0  }
 0x1ac   :  { %v273_v44 = vsub.f32 1.5, %v272_v43 }
 0x1ae   :  { %v274_v46 = vmul.f32 %v819_v39, %v273_v44 }
 0x1b0   :  { %v278_v47 = vsel %vm277_vm10, %v819_v39, %v274_v46 }
 0x1b1   :  { %v289_v49 = vmul.f32 %v288_v48, %v278_v47  ;;  %v1130_v47 = vmov 0  }
 0x1b2   :  { %808 = vset.pattern.permute.xlu0 %v1130_v47  ;;  %809 = vset.pattern.permute.xlu2 %v1130_v47 }
 0x1b3   :  { %v290_v50 = vmul.f32 %v289_v49, %v251_v25  ;;  %v470_v25 = vsub.f32 1.0, %v469_v23 }
 0x1b5   :  { %v766_v51 = vclamps-f32 %v290_v50, 1.0  ;;  %v471_v26 = vmul.f32 %v821_v22, %v470_v25 }
 0x1b7   :  { %v293_v52 = vsel %vm259_vm4, %v766_v51, inf  ;;  %v304_v53 = vsel %vm259_vm4, %v766_v51, -inf  ;;  %v472_v28 = vadd.f32 %v821_v22, %v471_v26 }
 0x1b8   :  { %294 = vmin.xlane.f32.xlu1 %v293_v52 }
 0x1b9   :  { %v474_v29 = vsel %vm473_vm14, %v821_v22, %v472_v28  ;;  %vm374_vm14 = vcmask 261120  }
 0x1c0   :  { %305 = vmax.xlane.f32.xlu1 %v304_v53  ;;  %v339_v53 = vld [vmem:[#allocation7] sm:$0xff] }
 0x22b   :  { %v295_v54 = vpop.xlane.xlu1 %294 }
 0x22c   :  { %v296_v55 = vrot.slane %v295_v54, 4 }
 0x22e   :  { %v297_v56 = vmin.f32 %v295_v54, %v296_v55 }
 0x230   :  { %v298_v57 = vrot.slane %v297_v56, 2 }
 0x232   :  { %v299_v58 = vmin.f32 %v297_v56, %v298_v57 }
 0x233   :  { %v306_v59 = vpop.xlane.xlu1 %305 }
 0x234   :  { %v307_v60 = vrot.slane %v306_v59, 4  ;;  %v300_v61 = vrot.slane %v299_v58, 1 }
 0x236   :  { %v308_v62 = vmax.f32 %v306_v59, %v307_v60  ;;  %v301_v63 = vmin.f32 %v299_v58, %v300_v61  ;;  %v199_v60 = vld [vmem:[#allocation13 + $0x18] sm:$0xff]  ;;  %v198_v61 = vld [vmem:[#allocation13 + $0x10] sm:$0xff] }
 0x237   :  { %390 = vmatpush.msra.mxu2 %v199_v60 }
 0x238   :  { %v309_v1 = vrot.slane %v308_v62, 2  ;;  %780 = vpush %v301_v63  ;;  %v196_v63 = vld [vmem:[#allocation13] sm:$0xff] }
 0x239   :  { %391 = vmatpush.msra.mxu2 %v198_v61 }
 0x23a   :  { %v310_v2 = vmax.f32 %v308_v62, %v309_v1  ;;  %v197_v62 = vld [vmem:[#allocation13 + $0x8] sm:$0xff] }
 0x23b   :  { %392 = vmatpush.msra.mxu2 %v197_v62 }
 0x23c   :  { %v311_v3 = vrot.slane %v310_v2, 1 }
 0x23d   :  { %393 = vmatpush.msra.mxu2 %v196_v63 }
 0x23e   :  { %v312_v4 = vmax.f32 %v310_v2, %v311_v3 }
 0x240   :  { %782 = vpush %v312_v4 }
 0x269   :  { %s781_s12 = spop %780 }
 0x26a   :  { %v303_v5 = vstv %s781_s12 }
 0x271   :  { %s783_s21 = spop %782 }
 0x272   :  { %v314_v6 = vstv %s783_s21 }
 0x273   :  { %v315_v7 = vsub.f32 %v314_v6, %v303_v5 }
 0x275   :  { %v316_v8 = vmul.f32 0.5, %v315_v7 }
 0x277   :  { %v317_v9 = vadd.f32 %v316_v8, %v303_v5 }
 0x279   :  { %vm318_vm12 = vcmp.lt.f32.partialorder %v766_v51, %v317_v9 }
 0x27a   :  { %v319_v11 = vsel %vm318_vm12, 0.0, %v1127_v10 }
 0x27b   :  { %v321_v12 = vsel %vm320_vm11, %v319_v11, 0.0 }
 0x27c   :  { %v322_v13 = vadd.f32 %v321_v12, %v1268_v24 }
 0x27e   :  { %v323_v14 = vsel %vm259_vm4, %v322_v13, 0.0 }
 0x27f   :  { %324 = vadd.xlane.f32.xlu2 %v323_v14 }
 0x287   :  { %466 = vadd.xlane.f32.xlu2 %v465_v16 }
 0x2f2   :  { %v325_v27 = vpop.xlane.xlu2 %324 }
 0x2f3   :  { %822 = vrsqrt.f32 %v325_v27  ;;  %vm332_vm2 = vweird.f32 %v325_v27 }
 0x2f4   :  { %824 = vrcp.f32 %v1129_v41 }
 0x2f9   :  { %v823_v30 = vpop.eup %822 }
 0x2fa   :  { %v327_v31 = vmul.f32 %v823_v30, %v325_v27  ;;  %v467_v32 = vpop.xlane.xlu2 %466  ;;  %vm333_vm1 = vweird.f32 %v823_v30  ;;  %v825_v42 = vpop.eup %824 }
 0x2fb   :  { %v475_v33 = vmul.f32 %v474_v29, %v467_v32  ;;  %vm334_vm3 = vmor %vm332_vm2, %vm333_vm1  ;;  %v502_v43 = vmul.f32 11.0, %v825_v42  ;;  %vm506_vm4 = vweird.f32 %v825_v42  ;;  %v202_v32 = vld [vmem:[#allocation14 + $0x8] sm:$0xff] }
 0x2fc   :  { %v328_v34 = vmul.f32 %v823_v30, %v327_v31  ;;  %v203_v31 = vld [vmem:[#allocation14 + $0x10] sm:$0xff] }
 0x2fd   :  { %v476_v35 = vsub.f32 %v1282_v15, %v475_v33  ;;  %v503_v44 = vsub.f32 1.0, %v502_v43  ;;  %v201_v33 = vld [vmem:[#allocation14] sm:$0xff] }
 0x2fe   :  { %v329_v36 = vmul.f32 0.5, %v328_v34 }
 0x2ff   :  { %771 = vmatpush.xpose.msk.msrb.mxu1 %vm477_vm15, %v476_v35  ;;  %v504_v45 = vmul.f32 %v825_v42, %v503_v44 }
 0x300   :  { %v330_v37 = vsub.f32 1.5, %v329_v36 }
 0x301   :  { %v505_v48 = vadd.f32 %v825_v42, %v504_v45 }
 0x302   :  { %v331_v38 = vmul.f32 %v823_v30, %v330_v37 }
 0x303   :  { %v507_v49 = vsel %vm506_vm4, %v825_v42, %v505_v48  ;;  %v1298_v48 = vld [vmem:[%s1336_s7] ss:$0 sm:$0xff] }
 0x304   :  { %v335_v39 = vsel %vm334_vm3, %v823_v30, %v331_v38  ;;  %v204_v30 = vld [vmem:[#allocation14 + $0x18] sm:$0xff]  ;;  %vm598_vm3 = vcmask 1043456  }
 0x305   :  { %v336_v40 = vmul.f32 %v335_v39, %v1255_v0  ;;  %419 = vmatpush.msra.mxu3 %v204_v30 }
 0x307   :  { %767 = vmatmul.msk.f32.vlgmr.msra.gmra.mxu1 %vm208_vm0, %v336_v40  ;;  %420 = vmatpush.msra.mxu3 %v203_v31 }
 0x309   :  { %421 = vmatpush.msra.mxu3 %v202_v32 }
 0x30b   :  { %422 = vmatpush.msra.mxu3 %v201_v33 }
 0x30d   :  { %640 = vmatpush.msrb.mxu3 %v199_v60 }
 0x30f   :  { %772 = vmatmul.msk.f32.vlgmr.msrb.gmra.mxu1 %vm477_vm15, %v476_v35  ;;  %641 = vmatpush.msrb.mxu3 %v198_v61  ;;  %v438_v61 = vld [vmem:[#allocation16 + $0x8] sm:$0xff] }
 0x310   :  { %456 = vmatpush.msrb.mxu0 %v438_v61 }
 0x311   :  { %642 = vmatpush.msrb.mxu3 %v197_v62  ;;  %v437_v62 = vld [vmem:[#allocation16] sm:$0xff] }
 0x312   :  { %457 = vmatpush.msrb.mxu0 %v437_v62 }
 0x313   :  { %643 = vmatpush.msrb.mxu3 %v196_v63 }
 0x314   :  { %666 = vmatpush.msra.mxu0 %v204_v30 }
 0x316   :  { %667 = vmatpush.msra.mxu0 %v203_v31 }
 0x318   :  { %668 = vmatpush.msra.mxu0 %v202_v32 }
 0x31a   :  { %669 = vmatpush.msra.mxu0 %v201_v33 }
 0x384   :  { %v365_v46 = vpop.f32.mrf.mxu1 }
 0x38c   :  { %v498_v50 = vpop.f32.mrf.mxu1 }
 0x38d   :  { %v508_v51 = vmul.f32 %v507_v49, %v498_v50 }
 0x38f   :  { %v509_v0 = vmul.f32 %v508_v51, %v1268_v24 }
 0x391   :  { %v511_v52 = vsel %vm510_vm5, %v509_v0, 0.0 }
 0x392   :  { %512 = vadd.xlane.f32.xlu0 %v511_v52  ;;  %v514_v54 = vrot.slane %v511_v52, 4 }
 0x394   :  { %v515_v55 = vadd.f32 %v514_v54, %v511_v52 }
 0x396   :  { %v516_v56 = vrot.slane %v515_v55, 2 }
 0x398   :  { %v517_v57 = vadd.f32 %v516_v56, %v515_v55 }
 0x39a   :  { %v518_v58 = vrot.slane %v517_v57, 1 }
 0x39c   :  { %v519_v59 = vadd.f32 %v518_v58, %v517_v57 }
 0x39e   :  { %826 = vrsqrt.f32 %v519_v59  ;;  %vm536_vm8 = vweird.f32 %v519_v59 }
 0x3a4   :  { %v827_v1 = vpop.eup %826 }
 0x3a5   :  { %v531_v2 = vmul.f32 %v827_v1, %v519_v59  ;;  %vm537_vm6 = vweird.f32 %v827_v1 }
 0x3a6   :  { %342 = vperm.xlu0 %808, %v339_v53   ;;  %vm538_vm10 = vmor %vm536_vm8, %vm537_vm6 }
 0x3a7   :  { %v532_v4 = vmul.f32 %v827_v1, %v531_v2 }
 0x3a9   :  { %v533_v5 = vmul.f32 0.5, %v532_v4 }
 0x3ab   :  { %v534_v9 = vsub.f32 1.5, %v533_v5 }
 0x3ad   :  { %v535_v13 = vmul.f32 %v827_v1, %v534_v9  ;;  %v587_v9 = vld [vmem:[#allocation10] sm:$0xff] }
 0x3af   :  { %v539_v17 = vsel %vm538_vm10, %v827_v1, %v535_v13 }
 0x405   :  { %v513_v3 = vpop.xlane.xlu0 %512 }
 0x406   :  { %828 = vrsqrt.f32 %v513_v3  ;;  %vm526_vm9 = vweird.f32 %v513_v3 }
 0x40c   :  { %v829_v6 = vpop.eup %828 }
 0x40d   :  { %v521_v7 = vmul.f32 %v829_v6, %v513_v3  ;;  %vm527_vm7 = vweird.f32 %v829_v6 }
 0x40e   :  { %vm528_vm12 = vmor %vm526_vm9, %vm527_vm7 }
 0x40f   :  { %v522_v8 = vmul.f32 %v829_v6, %v521_v7 }
 0x411   :  { %v523_v11 = vmul.f32 0.5, %v522_v8  ;;  %v588_v8 = vld [vmem:[#allocation10 + $0x8] sm:$0xf] }
 0x412   :  { %774 = vmatpush.msk.msrb.mxu2 %vm598_vm3, %v588_v8 }
 0x413   :  { %v524_v12 = vsub.f32 1.5, %v523_v11  ;;  %v589_v11 = vld [vmem:[#allocation11] sm:$0x3f] }
 0x414   :  { %617 = vmatpush.msrb.mxu2 %v587_v9 }
 0x415   :  { %v525_v14 = vmul.f32 %v829_v6, %v524_v12 }
 0x417   :  { %v529_v16 = vsel %vm528_vm12, %v829_v6, %v525_v14 }
 0x418   :  { %v343_v20 = vpop.permute.xlu0 %342  ;;  %v540_v21 = vmul.f32 %v539_v17, %v529_v16 }
 0x419   :  { %v366_v22 = vadd.f32 %v365_v46, %v343_v20 }
 0x41a   :  { %v541_v23 = vmul.f32 %v540_v21, %v508_v51 }
 0x41b   :  { %v369_v25 = vmul.f32 0.01, %v366_v22  ;;  %vm368_vm13 = vcmp.ge.f32.partialorder %v366_v22, 0.0 }
 0x41c   :  { %v773_v26 = vclamps-f32 %v541_v23, 1.0 }
 0x41d   :  { %v370_v27 = vsel %vm368_vm13, %v366_v22, %v369_v25 }
 0x41e   :  { %768 = vmatmul.msk.f32.vlgmr.msra.gmra.mxu2 %vm374_vm14, %v370_v27  ;;  %v555_v28 = vsel %vm510_vm5, %v773_v26, -inf  ;;  %v544_v29 = vsel %vm510_vm5, %v773_v26, inf }
 0x41f   :  { %556 = vmax.xlane.f32.xlu2 %v555_v28  ;;  %545 = vmin.xlane.f32.xlu1 %v544_v29 }
 0x437   :  { %592 = vperm.xlu2 %809, %v589_v11  }
 0x492   :  { %v557_v34 = vpop.xlane.xlu2 %556  ;;  %v546_v35 = vpop.xlane.xlu1 %545 }
 0x493   :  { %v558_v36 = vrot.slane %v557_v34, 4  ;;  %v547_v37 = vrot.slane %v546_v35, 4 }
 0x495   :  { %v559_v38 = vmax.f32 %v557_v34, %v558_v36  ;;  %v548_v39 = vmin.f32 %v546_v35, %v547_v37  ;;  %v686_v34 = vld [vmem:[#allocation16 + $0x18] sm:$0xff] }
 0x496   :  { %704 = vmatpush.msra.mxu1 %v686_v34 }
 0x497   :  { %v560_v40 = vrot.slane %v559_v38, 2  ;;  %v549_v41 = vrot.slane %v548_v39, 2 }
 0x499   :  { %v550_v42 = vmin.f32 %v548_v39, %v549_v41  ;;  %v561_v43 = vmax.f32 %v559_v38, %v560_v40 }
 0x49a   :  { %v593_v25 = vpop.permute.xlu2 %592 }
 0x49b   :  { %v551_v44 = vrot.slane %v550_v42, 1  ;;  %v562_v45 = vrot.slane %v561_v43, 1 }
 0x49d   :  { %v552_v46 = vmin.f32 %v550_v42, %v551_v44  ;;  %v563_v47 = vmax.f32 %v561_v43, %v562_v45 }
 0x49f   :  { %784 = vpush %v552_v46 }
 0x4a0   :  { %786 = vpush %v563_v47  ;;  %v715_v47 = vld [vmem:[#allocation17 + $0x18] sm:$0xff] }
 0x4a1   :  { %v395_v49 = vpop.f32.mrf.mxu2  ;;  %732 = vmatpush.msra.mxu2 %v715_v47 }
 0x4a2   :  { %v396_v50 = vadd.f32 %v1298_v48, %v395_v49  ;;  %v713_v49 = vld [vmem:[#allocation17 + $0x8] sm:$0xff] }
 0x4a4   :  { %v399_v51 = vmul.f32 0.01, %v396_v50  ;;  %vm398_vm1 = vcmp.ge.f32.partialorder %v396_v50, 0.0 }
 0x4a6   :  { %v400_v0 = vsel %vm398_vm1, %v396_v50, %v399_v51  ;;  %v712_v50 = vld [vmem:[#allocation17] sm:$0xff] }
 0x4a7   :  { %769 = vmatmul.msk.f32.vlgmr.msra.gmra.mxu3 %vm374_vm14, %v400_v0  ;;  %v206_v51 = vld [vmem:[%s1340_s11] sm:$0x1] }
 0x4d0   :  { %s785_s25 = spop %784 }
 0x4d1   :  { %v554_v52 = vstv %s785_s25  ;;  %s787_s1 = spop %786 }
 0x4d2   :  { %v565_v53 = vstv %s787_s1 }
 0x4d3   :  { %v566_v54 = vsub.f32 %v565_v53, %v554_v52 }
 0x4d5   :  { %v567_v55 = vmul.f32 0.5, %v566_v54 }
 0x4d7   :  { %v568_v56 = vadd.f32 %v567_v55, %v554_v52  ;;  %v716_v55 = vld [vmem:[%s1342_s13] sm:$0x1] }
 0x4d9   :  { %vm569_vm2 = vcmp.lt.f32.partialorder %v773_v26, %v568_v56 }
 0x4da   :  { %v570_v57 = vsel %vm569_vm2, 0.0, %v1127_v10  ;;  %v811_v10 = vld [vmem:[%s1338_s9] ss:$0 sm:$0xff] }
 0x4db   :  { %v571_v58 = vsel %vm320_vm11, %v570_v57, 0.0 }
 0x4dc   :  { %v572_v59 = vadd.f32 %v571_v58, %v1268_v24 }
 0x4de   :  { %v573_v60 = vsel %vm510_vm5, %v572_v59, 0.0 }
 0x4df   :  { %574 = vadd.xlane.f32.xlu1 %v573_v60 }
 0x52a   :  { %v424_v63 = vpop.f32.mrf.mxu3 }
 0x52b   :  { %v425_v18 = vadd.f32 %v811_v10, %v424_v63 }
 0x52d   :  { %v427_v19 = vsel %vm208_vm0, %v425_v18, 0.0 }
 0x52e   :  { %v428_v24 = vrot.slane %v427_v19, 4 }
 0x530   :  { %v429_v1 = vadd.f32 %v428_v24, %v427_v19 }
 0x532   :  { %v430_v2 = vrot.slane %v429_v1, 2 }
 0x534   :  { %v431_v3 = vadd.f32 %v430_v2, %v429_v1 }
 0x536   :  { %v432_v4 = vrot.slane %v431_v3, 1 }
 0x538   :  { %v433_v5 = vadd.f32 %v432_v4, %v431_v3 }
 0x53a   :  { %vm434_vm11 = vcmp.ge.f32.partialorder %v433_v5, 0.0  ;;  %v435_v6 = vmul.f32 0.0001, %v433_v5 }
 0x53c   :  { %v436_v7 = vsel %vm434_vm11, %v433_v5, %v435_v6 }
 0x53d   :  { %770 = vmatmul.msk.f32.vlgmr.msrb.gmra.mxu0 %vm208_vm0, %v436_v7 }
 0x552   :  { %v575_v12 = vpop.xlane.xlu1 %574 }
 0x553   :  { %830 = vrsqrt.f32 %v575_v12  ;;  %vm582_vm5 = vweird.f32 %v575_v12 }
 0x559   :  { %v831_v13 = vpop.eup %830 }
 0x55a   :  { %v577_v14 = vmul.f32 %v831_v13, %v575_v12  ;;  %vm583_vm4 = vweird.f32 %v831_v13 }
 0x55b   :  { %vm584_vm6 = vmor %vm582_vm5, %vm583_vm4 }
 0x55c   :  { %v578_v16 = vmul.f32 %v831_v13, %v577_v14 }
 0x55e   :  { %v579_v17 = vmul.f32 0.5, %v578_v16 }
 0x560   :  { %v580_v20 = vsub.f32 1.5, %v579_v17 }
 0x562   :  { %v581_v21 = vmul.f32 %v831_v13, %v580_v20 }
 0x564   :  { %v585_v22 = vsel %vm584_vm6, %v831_v13, %v581_v21 }
 0x565   :  { %v586_v23 = vmul.f32 %v585_v22, %v1282_v15  ;;  %v685_v15 = vld [vmem:[#allocation16 + $0x10] sm:$0xff] }
 0x566   :  { %705 = vmatpush.msra.mxu1 %v685_v15 }
 0x567   :  { %775 = vmatmul.msk.f32.vlgmr.msrb.gmra.mxu2 %vm477_vm15, %v586_v23  ;;  %vm674_vm15 = vcmask 128000  }
 0x5ba   :  { %v459_v35 = vpop.f32.mrf.mxu0 }
 0x5bb   :  { %v462_v0 = vadd.f32 %v459_v35, %v206_v51 }
 0x5ea   :  { %v619_v26 = vpop.f32.mrf.mxu2 }
 0x5eb   :  { %v620_v27 = vadd.f32 %v619_v26, %v593_v25 }
 0x5ed   :  { %vm622_vm7 = vcmp.ge.f32.partialorder %v620_v27, 0.0  ;;  %v623_v28 = vmul.f32 0.01, %v620_v27 }
 0x5ef   :  { %v624_v29 = vsel %vm622_vm7, %v620_v27, %v623_v28 }
 0x5f0   :  { %776 = vmatmul.msk.f32.vlgmr.msrb.gmra.mxu3 %vm374_vm14, %v624_v29 }
 0x673   :  { %v645_v30 = vpop.f32.mrf.mxu3 }
 0x674   :  { %v646_v31 = vadd.f32 %v1298_v48, %v645_v30  ;;  %v714_v48 = vld [vmem:[#allocation17 + $0x10] sm:$0xff] }
 0x675   :  { %733 = vmatpush.msra.mxu2 %v714_v48 }
 0x676   :  { %vm648_vm8 = vcmp.ge.f32.partialorder %v646_v31, 0.0  ;;  %v649_v32 = vmul.f32 0.01, %v646_v31 }
 0x677   :  { %734 = vmatpush.msra.mxu2 %v713_v49 }
 0x678   :  { %v650_v33 = vsel %vm648_vm8, %v646_v31, %v649_v32 }
 0x679   :  { %777 = vmatmul.msk.f32.vlgmr.msra.gmra.mxu0 %vm374_vm14, %v650_v33  ;;  %735 = vmatpush.msra.mxu2 %v712_v50 }
 0x6f6   :  { %v671_v36 = vpop.f32.mrf.mxu0 }
 0x6f7   :  { %v672_v37 = vadd.f32 %v811_v10, %v671_v36 }
 0x6f9   :  { %v675_v38 = vsel %vm674_vm15, %v672_v37, 0.0 }
 0x6fa   :  { %v676_v39 = vrot.slane %v675_v38, 4 }
 0x6fc   :  { %v677_v40 = vadd.f32 %v676_v39, %v675_v38 }
 0x6fe   :  { %v678_v41 = vrot.slane %v677_v40, 2 }
 0x700   :  { %v679_v42 = vadd.f32 %v678_v41, %v677_v40 }
 0x702   :  { %v680_v43 = vrot.slane %v679_v42, 1 }
 0x704   :  { %v681_v44 = vadd.f32 %v680_v43, %v679_v42 }
 0x706   :  { %vm682_vm9 = vcmp.ge.f32.partialorder %v681_v44, 0.0  ;;  %v683_v45 = vmul.f32 0.0001, %v681_v44 }
 0x708   :  { %v684_v46 = vsel %vm682_vm9, %v681_v44, %v683_v45 }
 0x709   :  { %778 = vmatmul.msk.f32.vlgmr.msra.gmra.mxu1 %vm208_vm0, %v684_v46  ;;  %vm740_vm0 = vcmask 57344  }
 0x786   :  { %v707_v52 = vpop.f32.mrf.mxu1 }
 0x787   :  { %v710_v53 = vadd.f32 %v707_v52, %v462_v0 }
 0x789   :  { %832 = vtanh.f32 %v710_v53 }
 0x78f   :  { %v833_v54 = vpop.eup %832 }
 0x790   :  { %779 = vmatmul.msk.f32.vlgmr.msra.gmra.mxu2 %vm374_vm14, %v833_v54 }
 0x813   :  { %v737_v56 = vpop.f32.mrf.mxu2 }
 0x814   :  { %v738_v57 = vadd.f32 %v737_v56, %v716_v55 }
 0x816   :  { %741 = vst.msk [vmem:[#allocation19] sm:$0x1] %vm740_vm0, %v738_v57 }
 0x817   :  { %752 = dma.vmem_to_hbm [thread:$0]  %s748_s29, 16, %s750_s15, [#allocation4]  }
 0x818   :  { %1110 = dma.done.wait [#allocation4], 16  }
 0x819   :  { %1111 = vsyncadd [#allocation4], 4294967280 }
 0x81a   :  { %757 = vsyncpa [#allocation3], 1 }
 0x81b   :  { %758 = vsyncpa [#allocation6], 1 }
 0x81c   :  { %759 = vsyncpa [#allocation9], 1 }
 0x81d   :  { %760 = vsyncpa [#allocation12], 1 }
 0x81e   :  { %761 = vsyncpa [#allocation15], 1 }
 0x81f   :  { %762 = vsyncpa [#allocation18], 1 }
 0x820   :  { %763 = vsyncpa [#allocation4], 1 }

</bundles_post_ra>
